<compile_context>
chip_gen: v6e
topology: v6e:2x2x1
jax: 0.10.0
libtpu: 0.0.40
codegen_flags: <defaults>
</compile_context>

<pallas_src>
import jax
import jax.numpy as jnp
from jax import lax
from jax.experimental import pallas as pl
from jax.experimental.pallas import tpu as pltpu


def _make_scatter_sum_kernel(n_total, tile_n, accumulate_in_out):
    """Build the per-tile kernel body.

    Grid layout: (feature_block j [parallel], atom_tile i [arbitrary/reduction]).
    """

    def kernel(idx_ref, src_ref, out_ref, *scratch):
        acc_ref = out_ref if accumulate_in_out else scratch[0]
        i = pl.program_id(1)  # atom-tile index (innermost reduction axis)

        @pl.when(i == 0)
        def _():
            acc_ref[...] = jnp.zeros_like(acc_ref)

        num_segments = acc_ref.shape[0]

        idx = idx_ref[...]        # (1, tile_n) int32 segment ids
        src_tile = src_ref[...]   # (tile_n, tile_d) features

        # Partial last atom tile: garbage rows must not reach the MXU (0 * NaN would
        # poison the accumulator) and garbage segment ids must not select a valid row.
        if n_total % tile_n != 0:
            base = i * tile_n
            col = lax.broadcasted_iota(jnp.int32, (1, tile_n), 1) + base
            idx = jnp.where(col < n_total, idx, -1)
            row = lax.broadcasted_iota(jnp.int32, (tile_n, 1), 0) + base
            src_tile = jnp.where(row < n_total, src_tile, jnp.zeros_like(src_tile))

        # One-hot scatter matrix [S, tile_n] via broadcast compare against a per-segment
        # iota column.  Indices outside [0, num_segments) contribute nothing.
        seg_col = lax.broadcasted_iota(jnp.int32, (num_segments, 1), 0)
        cmp = idx == seg_col  # (S, tile_n) bool

        if src_tile.dtype == jnp.bfloat16:
            one_hot = cmp.astype(jnp.bfloat16)
            rhs = src_tile
        elif src_tile.dtype == jnp.float32:
            one_hot = cmp.astype(jnp.float32)
            rhs = src_tile
        else:
            one_hot = cmp.astype(jnp.float32)
            rhs = src_tile.astype(jnp.float32)

        # Segment-sum as an MXU matmul, accumulated in f32.
        acc_ref[...] += jnp.dot(one_hot, rhs, preferred_element_type=jnp.float32)

        if not accumulate_in_out:
            @pl.when(i == pl.num_programs(1) - 1)
            def _():
                out_ref[...] = acc_ref[...].astype(out_ref.dtype)

    return kernel


def _pick_tiling(n, d, src_itemsize, out_itemsize, num_segments):
    """Choose (tile_n, tile_d, vmem_limit_bytes) from the device's VMEM budget."""
    try:
        vmem_cap = int(pltpu.get_tpu_info().vmem_capacity_bytes)
    except Exception:
        vmem_cap = 64 * 1024 * 1024  # conservative fallback (v7x per-TC size)
    budget = int(vmem_cap * 0.70)    # headroom for compiler-internal scratch

    # Feature-axis tiling: lane-dense (multiple of 128) blocks when D is large; the
    # "parallel" feature axis also spreads work across both v7x TensorCores.
    if d % 128 == 0 and d > 512:
        if d % 512 == 0:
            tile_d = 512
        elif d % 256 == 0:
            tile_d = 256
        else:
            tile_d = 128
    else:
        tile_d = d

    # Resident VMEM: the (S, tile_d) output block (+ f32 scratch for non-f32 outputs).
    resident = num_segments * tile_d * (4 + 2 * out_itemsize)
    # TODO(synk): if num_segments*tile_d approaches the VMEM budget, also block the
    # output over segments (sorted-index / scalar-prefetch path) instead of keeping the
    # whole accumulator resident.
    src_budget = budget - resident - (2 << 20)

    if n <= 256:
        tile_n = n  # single full block (block dims equal full array dims), no masking
    else:
        per_row = 2 * tile_d * src_itemsize  # double-buffered src tile
        tile_n = max(256, (max(src_budget, per_row * 256) // per_row) // 256 * 256)
        tile_n = int(min(tile_n, 8192, (n // 256) * 256))

    needed = (resident + 2 * tile_n * tile_d * src_itemsize
              + 2 * tile_n * 4 + (4 << 20))
    vmem_limit = int(min(max(needed, 32 << 20), vmem_cap * 0.9))
    return tile_n, tile_d, vmem_limit


def atomwise_sum_index(src, index, num_segments=None):
    """Scatter-sum `src` rows into `num_segments` buckets given by per-atom `index`."""
    if not jnp.issubdtype(index.dtype, jnp.integer):
        raise RuntimeError("index must have an integer dtype")
    if num_segments is None:
        # Mirrors `int(index.max().item()) + 1`; this forces a device->host sync, so
        # callers should pass num_segments statically (enables jit / async dispatch).
        num_segments = int(jax.device_get(jnp.max(index))) + 1
    num_segments = int(num_segments)

    trailing = src.shape[1:]
    n = int(src.shape[0])
    d = 1
    for s in trailing:
        d *= int(s)
    src2d = src.reshape(n, d)                       # contiguous reshape: no HBM copy
    idx2d = index.astype(jnp.int32).reshape(1, n)   # tiny

    out_dtype = src.dtype
    src_itemsize = jnp.dtype(src.dtype).itemsize
    out_itemsize = jnp.dtype(out_dtype).itemsize
    tile_n, tile_d, vmem_limit = _pick_tiling(n, d, src_itemsize, out_itemsize,
                                              num_segments)

    accumulate_in_out = jnp.dtype(out_dtype) == jnp.dtype(jnp.float32)
    kernel = _make_scatter_sum_kernel(n, tile_n, accumulate_in_out)

    grid = (d // tile_d, pl.cdiv(n, tile_n))  # (feature blocks, atom tiles)
    scratch_shapes = [] if accumulate_in_out else [
        pltpu.VMEM((num_segments, tile_d), jnp.float32)]

    out2d = pl.pallas_call(
        kernel,
        out_shape=jax.ShapeDtypeStruct((num_segments, d), out_dtype),
        grid_spec=pltpu.PrefetchScalarGridSpec(
            num_scalar_prefetch=0,
            grid=grid,
            in_specs=[
                pl.BlockSpec((1, tile_n), lambda j, i: (0, i)),       # segment ids
                pl.BlockSpec((tile_n, tile_d), lambda j, i: (i, j)),  # atom features
            ],
            out_specs=pl.BlockSpec((num_segments, tile_d), lambda j, i: (0, j)),
            scratch_shapes=scratch_shapes,
        ),
        compiler_params=pltpu.CompilerParams(
            dimension_semantics=("parallel", "arbitrary"),
            vmem_limit_bytes=vmem_limit,
        ),
    )(idx2d, src2d)

    return out2d.reshape((num_segments,) + trailing)


class AtomwiseSumIndex:
    """JAX/Pallas port of klay AtomwiseSumIndex (forward pass only).

    Note: the PyTorch docstring mentions eval() returning only the first row, but the
    shown forward() always returns the full scatter-summed tensor, which is what we do.
    Indices outside [0, num_segments) are silently dropped (PyTorch would error).
    """

    def __call__(self, src, index, num_segments=None):
        return atomwise_sum_index(src, index, num_segments)

    @staticmethod
    def reference(src, index, num_segments=None):
        """Pure-JAX reference (segment_sum) for correctness checking."""
        if num_segments is None:
            num_segments = int(jax.device_get(jnp.max(index))) + 1
        n = src.shape[0]
        flat = src.reshape(n, -1)
        out = jax.ops.segment_sum(flat, index, num_segments=num_segments)
        return out.reshape((num_segments,) + src.shape[1:])


if __name__ == "__main__":
    key = jax.random.PRNGKey(0)
    k_src, k_idx = jax.random.split(key)

    # Exercises multi-tile accumulation + in-kernel masking of the partial last tile.
    n_atoms, n_feat, n_structures = 300, 16, 5
    src = jax.random.normal(k_src, (n_atoms, n_feat), jnp.float32)
    index = jax.random.randint(k_idx, (n_atoms,), 0, n_structures, dtype=jnp.int32)
    # Make sure every structure id actually appears so dim_size == n_structures.
    index = index.at[:n_structures].set(jnp.arange(n_structures, dtype=jnp.int32))

    layer = AtomwiseSumIndex()

    # f32 path: accumulates directly into the resident output block.
    out = jax.block_until_ready(layer(src, index, num_segments=n_structures))
    ref = layer.reference(src, index, num_segments=n_structures)
    assert out.shape == (n_structures, n_feat), out.shape
    assert jnp.allclose(out, ref, atol=1e-4, rtol=1e-4), "f32 mismatch vs reference"

    # bf16 path: bf16 MXU operands + separate f32 scratch accumulator + final downcast.
    src_bf16 = src.astype(jnp.bfloat16)
    out_bf16 = jax.block_until_ready(layer(src_bf16, index, num_segments=n_structures))
    ref_bf16 = jax.ops.segment_sum(src_bf16.astype(jnp.float32), index,
                                   num_segments=n_structures)
    assert out_bf16.dtype == jnp.bfloat16
    assert jnp.allclose(out_bf16.astype(jnp.float32), ref_bf16, atol=0.15, rtol=0.05), \
        "bf16 mismatch vs reference"

    print("KERNEL_OK")
</pallas_src>

<mosaic_0001>
module attributes {stable_mosaic.version = 11 : i64} {
  func.func @kernel(%arg0: i32, %arg1: i32, %arg2: memref<1x256xi32, #tpu.memory_space<vmem>>, %arg3: memref<256x16xf32, #tpu.memory_space<vmem>>, %arg4: memref<5x16xf32, #tpu.memory_space<vmem>>) attributes {dimension_semantics = [#tpu.dimension_semantics<parallel>, #tpu.dimension_semantics<arbitrary>], iteration_bounds = array<i64: 1, 2>, scalar_prefetch = 0 : i64, scratch_operands = 0 : i64, tpu.core_type = #tpu.core_type<tc>, window_params = [{transform_indices = @transform_0, window_bounds = array<i64: 1, 256>}, {transform_indices = @transform_1, window_bounds = array<i64: 256, 16>}, {transform_indices = @transform_2, window_bounds = array<i64: 5, 16>}]} {
    %c0_i32 = arith.constant 0 : i32
    %0 = arith.cmpi eq, %arg1, %c0_i32 : i32
    %1 = arith.extui %0 : i1 to i32
    %c0_i32_0 = arith.constant 0 : i32
    %2 = arith.cmpi ne, %1, %c0_i32_0 : i32
    scf.if %2 {
      %cst_10 = arith.constant 0.000000e+00 : f32
      %32 = vector.broadcast %cst_10 : f32 to vector<5x16xf32>
      %c0_11 = arith.constant 0 : index
      %c0_12 = arith.constant 0 : index
      %33 = vector.load %arg4[%c0_11, %c0_12] : memref<5x16xf32, #tpu.memory_space<vmem>>, vector<5x16xf32>
      tpu.vector_store %arg4[%c0_11, %c0_12], %32 {strides = array<i32>} : memref<5x16xf32, #tpu.memory_space<vmem>>, vector<5x16xf32>,
    } else {
    }
    %c0 = arith.constant 0 : index
    %c0_1 = arith.constant 0 : index
    %3 = vector.load %arg2[%c0, %c0_1] : memref<1x256xi32, #tpu.memory_space<vmem>>, vector<1x256xi32>
    %c0_2 = arith.constant 0 : index
    %c0_3 = arith.constant 0 : index
    %4 = vector.load %arg3[%c0_2, %c0_3] : memref<256x16xf32, #tpu.memory_space<vmem>>, vector<256x16xf32>
    %c256_i32 = arith.constant 256 : i32
    %5 = arith.muli %arg1, %c256_i32 : i32
    %6 = tpu.iota {dimensions = array<i32: 1>} : vector<1x256xi32>
    %7 = vector.broadcast %5 : i32 to vector<1x256xi32>
    %8 = arith.addi %6, %7 : vector<1x256xi32>
    %c300_i32 = arith.constant 300 : i32
    %9 = vector.broadcast %c300_i32 : i32 to vector<1x256xi32>
    %10 = arith.cmpi slt, %8, %9 : vector<1x256xi32>
    %c-1_i32 = arith.constant -1 : i32
    %11 = vector.broadcast %c-1_i32 : i32 to vector<1x256xi32>
    %12 = arith.select %10, %3, %11 : vector<1x256xi1>, vector<1x256xi32>
    %13 = tpu.iota {dimensions = array<i32: 0>} : vector<256x1xi32>
    %14 = vector.broadcast %5 : i32 to vector<256x1xi32>
    %15 = arith.addi %13, %14 : vector<256x1xi32>
    %c300_i32_4 = arith.constant 300 : i32
    %16 = vector.broadcast %c300_i32_4 : i32 to vector<256x1xi32>
    %17 = arith.cmpi slt, %15, %16 : vector<256x1xi32>
    %cst = arith.constant 0.000000e+00 : f32
    %18 = vector.broadcast %cst : f32 to vector<256x16xf32>
    %19 = vector.shape_cast %17 : vector<256x1xi1> to vector<256x1xi1>
    %20 = vector.broadcast %19 : vector<256x1xi1> to vector<256x16xi1>
    %21 = arith.select %20, %4, %18 : vector<256x16xi1>, vector<256x16xf32>
    %22 = tpu.iota {dimensions = array<i32: 0>} : vector<5x1xi32>
    %23 = vector.broadcast %12 : vector<1x256xi32> to vector<5x256xi32>
    %24 = vector.broadcast %22 : vector<5x1xi32> to vector<5x256xi32>
    %25 = arith.cmpi eq, %23, %24 : vector<5x256xi32>
    %26 = arith.extui %25 : vector<5x256xi1> to vector<5x256xi32>
    %27 = arith.sitofp %26 : vector<5x256xi32> to vector<5x256xf32>
    %c0_5 = arith.constant 0 : index
    %c0_6 = arith.constant 0 : index
    %28 = vector.load %arg4[%c0_5, %c0_6] : memref<5x16xf32, #tpu.memory_space<vmem>>, vector<5x16xf32>
    %cst_7 = arith.constant dense<0.000000e+00> : vector<5x16xf32>
    %29 = tpu.matmul %27, %21, %cst_7 {dimension_numbers = #tpu.dot_dimension_numbers<[1], [0], [0], [1], [0, 0, 1, 1], [], []>} : vector<5x256xf32>, vector<256x16xf32>, vector<5x16xf32> -> vector<5x16xf32>
    %30 = arith.addf %28, %29 : vector<5x16xf32>
    %c0_8 = arith.constant 0 : index
    %c0_9 = arith.constant 0 : index
    %31 = vector.load %arg4[%c0_8, %c0_9] : memref<5x16xf32, #tpu.memory_space<vmem>>, vector<5x16xf32>
    tpu.vector_store %arg4[%c0_8, %c0_9], %30 {strides = array<i32>} : memref<5x16xf32, #tpu.memory_space<vmem>>, vector<5x16xf32>,
    return
  }
  func.func @transform_0(%arg0: i32, %arg1: i32) -> (i32, i32) {
    %c0_i32 = arith.constant 0 : i32
    %c0_i32_0 = arith.constant 0 : i32
    return %c0_i32, %arg1 : i32, i32
  }
  func.func @transform_1(%arg0: i32, %arg1: i32) -> (i32, i32) {
    %c0_i32 = arith.constant 0 : i32
    return %arg1, %arg0 : i32, i32
  }
  func.func @transform_2(%arg0: i32, %arg1: i32) -> (i32, i32) {
    %c0_i32 = arith.constant 0 : i32
    %c0_i32_0 = arith.constant 0 : i32
    return %c0_i32, %arg0 : i32, i32
  }
}

</mosaic_0001>

<bundles_post_ra>
// kernel: tpu_custom_call.1
= control target key start
LH: loop header
LB: loop body
LE: loop exit
PB: predicated region body
PF: predicated region fallthrough
CT: control target
= control target key end

     0   :  { %7 = vsyncpa [#allocation3], 0  ;;  %s816_s9 = smov 0   ;;  %s818_s10 = smov 0   ;;  %s997_s0 = inlined_call_operand.vmem [shape: s32[1,300], index: 0, kind: input, shape index: {}]   ;;  %s998_s1 = inlined_call_operand.vmem [shape: f32[300,16], index: 1, kind: input, shape index: {}]   ;;  %s999_s2 = inlined_call_operand.hbm [shape: f32[5,16], index: 2, kind: output, shape index: {}]  }
   0x1   :  { %s820_s11 = smov 0  }
   0x2 LB: > { %s629_s12 = sadd.s32 4294967295, %s796_s11   ;;  %s22_s13 = sadd.s32 1, %s792_s10  ;;  %s796_s11 = sphi %s820_s11, %s13_s11   ;;  %s792_s10 = sphi %s818_s10, %s1002_s10   ;;  %s788_s9 = sphi %s816_s9, %s1001_s9  }
   0x3   : > { %p23_p0 = scmp.ge.s32.totalorder %s22_s13, 2  ;;  %p632_p1 = scmp.ge.s32.totalorder %s796_s11, 1 }
   0x4   : > { %p157_p2 = scmp.lt.s32.totalorder %s796_s11, 3 }
   0x5   : > { %s1004_s13 = smov (%p23_p0, %s22_s13), 0 }
   0x6   : > { %p158_p3 = pnand %p632_p1, %p157_p2 }
   0x7   : > { %s633_s14 = sshll.u32 (!%p158_p3), %s788_s9, 1  ;;  %s634_s15 = sshll.u32 (!%p158_p3), %s788_s9, 5 }
   0x8   : > { %161 = sbr.rel (%p158_p3) target bundleno = 267 (0x10b), region = 28  ;;  %p194_p4 = scmp.lt.s32.totalorder (!%p158_p3), %s633_s14, 2 }
   0x9   : > { %p207_p5 = scmp.lt.s32.totalorder (!%p158_p3), %s634_s15, 37  ;;  %p636_p6 = scmp.ne.s32.totalorder (!%p158_p3), %s788_s9, 0 }
   0xd   : > { %s1006_s14 = smov (!%p194_p4, %s633_s14), 2  ;;  %s1008_s15 = smov (!%p207_p5, %s634_s15), 37 }
   0xe   : > { %s196_s18 = scalar_lea.vmem %s997_s0, %s1006_s14  ;;  %s635_s19 = sshll.u32 %s1008_s15, 3 }
   0xf   : > { %s848_s22 = scalar_lea.vmem %s998_s1, %s635_s19  ;;  %222 = sbr.rel (%p636_p6) target bundleno = 22 (0x16), region = 32 }
  0x14   : > { %vm223_vm0 = vcmask 126976   ;;  %v798_v0 = vmov 0.0  }
  0x15   : > { %224 = vst.msk [vmem:[#allocation2] sm:$0x1f] %vm223_vm0, %v798_v0 }
  0x16 PF: > { %s637_s23 = sshll.u32 %s788_s9, 8  ;;  %v259_v1 = vlaneseq  ;;  %v257_v12 = vld [vmem:[%s848_s22 + $0xf8] sm:$0xff]  ;;  %v256_v20 = vld [vmem:[%s848_s22 + $0xf0] sm:$0xff]  ;;  %v255_v24 = vld [vmem:[%s848_s22 + $0xe8] sm:$0xff]  ;;  %s800_s26 = smov [#allocation2]  }
  0x17   : > { %v855_v3 = vstv %s637_s23  ;;  %v241_v17 = vld [vmem:[%s848_s22 + $0x78] sm:$0xff]  ;;  %v240_v22 = vld [vmem:[%s848_s22 + $0x70] sm:$0xff]  ;;  %v239_v29 = vld [vmem:[%s848_s22 + $0x68] sm:$0xff]  ;;  %s567_s27 = sshll.u32 %s800_s26, 4  ;;  %p973_p7 = scmp.eq.s32.totalorder %s629_s12, 1  ;;  %s568_s27 = int_to_ptr.vmem [resolvable:$true] %s567_s27 }
  0x18   : > { %v853_v2 = vshrl.u32 %v259_v1, 7  ;;  %v254_v33 = vld [vmem:[%s848_s22 + $0xe0] sm:$0xff]  ;;  %v253_v40 = vld [vmem:[%s848_s22 + $0xd8] sm:$0xff]  ;;  %v252_v45 = vld [vmem:[%s848_s22 + $0xd0] sm:$0xff]  ;;  %s746_s29 = scalar_lea.vmem %s568_s27, 128  ;;  %p753_p11 = scmp.lt.s32.totalorder %s568_s27, %s568_s27 }
  0x19   : > { %v238_v37 = vld [vmem:[%s848_s22 + $0x60] sm:$0xff]  ;;  %v237_v42 = vld [vmem:[%s848_s22 + $0x58] sm:$0xff]  ;;  %v236_v49 = vld [vmem:[%s848_s22 + $0x50] sm:$0xff]  ;;  %p747_p8 = scmp.ne.s32.totalorder %s568_s27, %s746_s29  ;;  %p754_p12 = scmp.lt.s32.totalorder %s746_s29, %s746_s29 }
  0x1a   : > { %v309_v4 = vadd.s32 248, %v853_v2  ;;  %v293_v5 = vadd.s32 120, %v853_v2  ;;  %v308_v6 = vadd.s32 240, %v853_v2  ;;  %v292_v7 = vadd.s32 112, %v853_v2  ;;  %v251_v53 = vld [vmem:[%s848_s22 + $0xc8] sm:$0xff]  ;;  %v250_v59 = vld [vmem:[%s848_s22 + $0xc0] sm:$0xff] }
  0x1b   : > { %v307_v8 = vadd.s32 232, %v853_v2  ;;  %v291_v9 = vadd.s32 104, %v853_v2  ;;  %v306_v10 = vadd.s32 224, %v853_v2  ;;  %v290_v11 = vadd.s32 96, %v853_v2  ;;  %v235_v57 = vld [vmem:[%s848_s22 + $0x48] sm:$0xff]  ;;  %v234_v61 = vld [vmem:[%s848_s22 + $0x40] sm:$0xff]  ;;  %p748_p9 = pnand %p747_p8, %p973_p7  ;;  %p755_p13 = por %p754_p12, %p753_p11 }
  0x1c   : > { %v341_v13 = vadd.s32 %v309_v4, %v855_v3  ;;  %v325_v14 = vadd.s32 %v293_v5, %v855_v3  ;;  %v340_v15 = vadd.s32 %v308_v6, %v855_v3  ;;  %v324_v16 = vadd.s32 %v292_v7, %v855_v3  ;;  %v249_v4 = vld [vmem:[%s848_s22 + $0xb8] sm:$0xff] }
  0x1d   : > { %v339_v18 = vadd.s32 %v307_v8, %v855_v3  ;;  %v323_v19 = vadd.s32 %v291_v9, %v855_v3  ;;  %v338_v21 = vadd.s32 %v306_v10, %v855_v3  ;;  %v322_v23 = vadd.s32 %v290_v11, %v855_v3  ;;  %v233_v8 = vld [vmem:[%s848_s22 + $0x38] sm:$0xff]  ;;  %v248_v11 = vld [vmem:[%s848_s22 + $0xb0] sm:$0xff]  ;;  %p749_p10 = pneg %p748_p9 }
  0x1e   : > { %vm373_vm1 = vcmp.lt.s32.totalorder %v341_v13, 300  ;;  %vm357_vm2 = vcmp.lt.s32.totalorder %v325_v14, 300  ;;  %vm372_vm3 = vcmp.lt.s32.totalorder %v340_v15, 300  ;;  %vm356_vm4 = vcmp.lt.s32.totalorder %v324_v16, 300  ;;  %v232_v13 = vld [vmem:[%s848_s22 + $0x30] sm:$0xff] }
  0x1f   : > { %678 = vmatprep.subr.msk.mxu0 %vm373_vm1, %v257_v12  ;;  %vm371_vm5 = vcmp.lt.s32.totalorder %v339_v18, 300  ;;  %v305_v25 = vadd.s32 216, %v853_v2  ;;  %v289_v26 = vadd.s32 88, %v853_v2  ;;  %v304_v27 = vadd.s32 208, %v853_v2  ;;  %v231_v18 = vld [vmem:[%s848_s22 + $0x28] sm:$0xff]  ;;  %p756_p0 = pnand %p755_p13, %p749_p10 }
  0x20   : > { %679 = vmatpush3.msk.msra.mxu0 %vm357_vm2, %v241_v17  ;;  %v288_v28 = vadd.s32 80, %v853_v2  ;;  %vm355_vm6 = vcmp.lt.s32.totalorder %v323_v19, 300  ;;  %v303_v30 = vadd.s32 200, %v853_v2  ;;  %v287_v31 = vadd.s32 72, %v853_v2  ;;  %v247_v17 = vld [vmem:[%s848_s22 + $0xa8] sm:$0xff] }
  0x21   : > { %680 = vmatprep.subr.msk.mxu0 %vm372_vm3, %v256_v20  ;;  %v302_v32 = vadd.s32 192, %v853_v2  ;;  %vm370_vm7 = vcmp.lt.s32.totalorder %v338_v21, 300  ;;  %v337_v34 = vadd.s32 %v305_v25, %v855_v3  ;;  %v321_v35 = vadd.s32 %v289_v26, %v855_v3 }
  0x22   : > { %681 = vmatpush3.msk.msra.mxu0 %vm356_vm4, %v240_v22  ;;  %v336_v36 = vadd.s32 %v304_v27, %v855_v3  ;;  %vm354_vm8 = vcmp.lt.s32.totalorder %v322_v23, 300  ;;  %v320_v38 = vadd.s32 %v288_v28, %v855_v3  ;;  %v286_v39 = vadd.s32 64, %v853_v2  ;;  %v225_v22 = vld [vmem:[%s196_s18] sm:$0x3] }
  0x23   : > { %682 = vmatprep.subr.msk.mxu0 %vm371_vm5, %v255_v24  ;;  %vm369_vm9 = vcmp.lt.s32.totalorder %v337_v34, 300  ;;  %v335_v41 = vadd.s32 %v303_v30, %v855_v3  ;;  %vm353_vm10 = vcmp.lt.s32.totalorder %v321_v35, 300  ;;  %v319_v43 = vadd.s32 %v287_v31, %v855_v3  ;;  %v246_v24 = vld [vmem:[%s848_s22 + $0xa0] sm:$0xff] }
  0x24   : > { %683 = vmatpush3.msk.msra.mxu0 %vm355_vm6, %v239_v29  ;;  %v334_v44 = vadd.s32 %v302_v32, %v855_v3  ;;  %vm368_vm11 = vcmp.lt.s32.totalorder %v336_v36, 300  ;;  %v301_v46 = vadd.s32 184, %v853_v2  ;;  %v285_v47 = vadd.s32 56, %v853_v2  ;;  %v230_v29 = vld [vmem:[%s848_s22 + $0x20] sm:$0xff]  ;;  %v229_v36 = vld [vmem:[%s848_s22 + $0x18] sm:$0xff] }
  0x25   : > { %684 = vmatprep.subr.msk.mxu0 %vm370_vm7, %v254_v33  ;;  %v300_v48 = vadd.s32 176, %v853_v2  ;;  %vm352_vm12 = vcmp.lt.s32.totalorder %v320_v38, 300  ;;  %v318_v50 = vadd.s32 %v286_v39, %v855_v3  ;;  %v284_v51 = vadd.s32 48, %v853_v2  ;;  %v245_v33 = vld [vmem:[%s848_s22 + $0x98] sm:$0xff]  ;;  %v244_v38 = vld [vmem:[%s848_s22 + $0x90] sm:$0xff] }
  0x26   : > { %685 = vmatpush3.msk.msra.mxu0 %vm354_vm8, %v238_v37  ;;  %v299_v52 = vadd.s32 168, %v853_v2  ;;  %vm367_vm13 = vcmp.lt.s32.totalorder %v335_v41, 300  ;;  %v333_v54 = vadd.s32 %v301_v46, %v855_v3  ;;  %v283_v55 = vadd.s32 40, %v853_v2 }
  0x27   : > { %686 = vmatprep.subr.msk.mxu0 %vm369_vm9, %v253_v40  ;;  %v298_v56 = vadd.s32 160, %v853_v2  ;;  %vm351_vm14 = vcmp.lt.s32.totalorder %v319_v43, 300  ;;  %v317_v58 = vadd.s32 %v285_v47, %v855_v3  ;;  %vm366_vm15 = vcmp.lt.s32.totalorder %v334_v44, 300  ;;  %v227_v47 = vld [vmem:[%s848_s22 + $0x8] sm:$0xff] }
  0x28   : > { %687 = vmatpush3.msk.msra.mxu0 %vm353_vm10, %v237_v42  ;;  %v332_v60 = vadd.s32 %v300_v48, %v855_v3  ;;  %vm350_vm0 = vcmp.lt.s32.totalorder %v318_v50, 300  ;;  %v316_v62 = vadd.s32 %v284_v51, %v855_v3  ;;  %v331_v63 = vadd.s32 %v299_v52, %v855_v3  ;;  %v228_v42 = vld [vmem:[%s848_s22 + $0x10] sm:$0xff]  ;;  %v242_v48 = vld [vmem:[%s848_s22 + $0x80] sm:$0xff] }
  0x29   : > { %688 = vmatprep.subr.msk.mxu0 %vm368_vm11, %v252_v45  ;;  %v282_v0 = vadd.s32 32, %v853_v2  ;;  %vm365_vm1 = vcmp.lt.s32.totalorder %v333_v54, 300  ;;  %v315_v5 = vadd.s32 %v283_v55, %v855_v3  ;;  %v330_v6 = vadd.s32 %v298_v56, %v855_v3  ;;  %v243_v45 = vld [vmem:[%s848_s22 + $0x88] sm:$0xff]  ;;  %v226_v50 = vld [vmem:[%s848_s22] sm:$0xff] }
  0x2a   : > { %689 = vmatpush3.msk.msra.mxu0 %vm352_vm12, %v236_v49  ;;  %v297_v7 = vadd.s32 152, %v853_v2  ;;  %vm349_vm2 = vcmp.lt.s32.totalorder %v317_v58, 300  ;;  %v281_v9 = vadd.s32 24, %v853_v2  ;;  %v260_v10 = vand.u32 127, %v259_v1  ;;  %v484_v51 = vld [vmem:[#allocation2] sm:$0x1f] }
  0x2b   : > { %690 = vmatprep.subr.msk.mxu0 %vm367_vm13, %v251_v53  ;;  %vm364_vm3 = vcmp.lt.s32.totalorder %v332_v60, 300  ;;  %v296_v12 = vadd.s32 144, %v853_v2  ;;  %vm348_vm4 = vcmp.lt.s32.totalorder %v316_v62, 300  ;;  %v314_v14 = vadd.s32 %v282_v0, %v855_v3 }
  0x2c   : > { %691 = vmatpush3.msk.msra.mxu0 %vm351_vm14, %v235_v57  ;;  %v280_v15 = vadd.s32 16, %v853_v2  ;;  %v295_v16 = vadd.s32 136, %v853_v2  ;;  %vm363_vm5 = vcmp.lt.s32.totalorder %v331_v63, 300  ;;  %vm347_vm6 = vcmp.lt.s32.totalorder %v315_v5, 300 }
  0x2d   : > { %692 = vmatprep.subr.msk.mxu0 %vm366_vm15, %v250_v59  ;;  %vm362_vm7 = vcmp.lt.s32.totalorder %v330_v6, 300  ;;  %v329_v1 = vadd.s32 %v297_v7, %v855_v3  ;;  %v313_v19 = vadd.s32 %v281_v9, %v855_v3  ;;  %v279_v20 = vadd.s32 8, %v853_v2 }
  0x2e   : > { %693 = vmatpush3.msk.msra.mxu0 %vm350_vm0, %v234_v61  ;;  %v294_v21 = vadd.s32 128, %v853_v2  ;;  %v261_v23 = vadd.s32 128, %v260_v10  ;;  %v328_v25 = vadd.s32 %v296_v12, %v855_v3  ;;  %v269_v26 = vsub.s32 0, %v853_v2 }
  0x2f   : > { %694 = vmatprep.subr.msk.mxu0 %vm365_vm1, %v249_v4  ;;  %v273_v27 = vsub.s32 1, %v853_v2  ;;  %v263_v28 = vadd.s32 %v855_v3, %v260_v10  ;;  %vm346_vm8 = vcmp.lt.s32.totalorder %v314_v14, 300  ;;  %v312_v30 = vadd.s32 %v280_v15, %v855_v3 }
  0x30   : > { %695 = vmatpush3.msk.msra.mxu0 %vm349_vm2, %v233_v8  ;;  %v327_v31 = vadd.s32 %v295_v16, %v855_v3  ;;  %v264_v32 = vadd.s32 %v855_v3, %v261_v23  ;;  %vm361_vm9 = vcmp.lt.s32.totalorder %v329_v1, 300  ;;  %v270_v34 = vrot.slane %v225_v22, %v269_v26 }
  0x31   : > { %696 = vmatprep.subr.msk.mxu0 %vm364_vm3, %v248_v11  ;;  %v274_v35 = vrot.slane %v225_v22, %v273_v27  ;;  %vm265_vm10 = vcmp.lt.s32.totalorder %v263_v28, 300  ;;  %vm345_vm11 = vcmp.lt.s32.totalorder %v313_v19, 300  ;;  %v311_v37 = vadd.s32 %v279_v20, %v855_v3 }
  0x32   : > { %697 = vmatpush3.msk.msra.mxu0 %vm348_vm4, %v232_v13  ;;  %vm266_vm12 = vcmp.lt.s32.totalorder %v264_v32, 300  ;;  %vm360_vm13 = vcmp.lt.s32.totalorder %v328_v25, 300  ;;  %v326_v39 = vadd.s32 %v294_v21, %v855_v3  ;;  %v275_v41 = vsel %vm265_vm10, %v270_v34, 4294967295 }
  0x33   : > { %698 = vmatprep.subr.msk.mxu0 %vm363_vm5, %v247_v17  ;;  %v276_v40 = vsel %vm266_vm12, %v274_v35, 4294967295  ;;  %vm344_vm14 = vcmp.lt.s32.totalorder %v312_v30, 300  ;;  %v310_v43 = vadd.s32 %v853_v2, %v855_v3  ;;  %vm359_vm15 = vcmp.lt.s32.totalorder %v327_v31, 300 }
  0x34   : > { %699 = vmatpush3.msk.msra.mxu0 %vm347_vm6, %v231_v18  ;;  %v477_v44 = vrot.slane %v276_v40, %v269_v26  ;;  %v473_v46 = vrot.slane %v275_v41, %v269_v26  ;;  %vm343_vm0 = vcmp.lt.s32.totalorder %v311_v37, 300  ;;  %vm358_vm2 = vcmp.lt.s32.totalorder %v326_v39, 300 }
  0x35   : > { %700 = vmatprep.subr.msk.mxu0 %vm362_vm7, %v246_v24  ;;  %v799_v49 = vmov 1.0   ;;  %vm342_vm3 = vcmp.lt.s32.totalorder %v310_v43, 300  ;;  %vm556_vm5 = vcmask 126976  }
  0x36   : > { %701 = vmatpush3.msk.msra.mxu0 %vm346_vm8, %v230_v29  ;;  %vm479_vm1 = vcmp.eq.s32.totalorder %v477_v44, %v853_v2  ;;  %vm478_vm4 = vcmp.eq.s32.totalorder %v473_v46, %v853_v2 }
  0x37   : > { %702 = vmatprep.subr.msk.mxu0 %vm361_vm9, %v245_v33  ;;  %672 = vmatprep.mubr.msk.f32.mxu0 %vm479_vm1, %v799_v49 }
  0x38   : > { %703 = vmatpush3.msk.msra.mxu0 %vm345_vm11, %v229_v36 }
  0x39   : > { %704 = vmatprep.subr.msk.mxu0 %vm360_vm13, %v244_v38 }
  0x3a   : > { %705 = vmatpush3.msk.msra.mxu0 %vm344_vm14, %v228_v42 }
  0x3b   : > { %706 = vmatprep.subr.msk.mxu0 %vm359_vm15, %v243_v45 }
  0x3c   : > { %707 = vmatpush3.msk.msra.mxu0 %vm343_vm0, %v227_v47 }
  0x3d   : > { %708 = vmatprep.subr.msk.mxu0 %vm358_vm2, %v242_v48 }
  0x3e   : > { %709 = vmatpush3.msk.msra.mxu0 %vm342_vm3, %v226_v50 }
  0x3f   : > { %673 = vmatmul.mubr.msk.f32.vlgmr.msra.gmra.mxu0 %vm478_vm4, %v799_v49 }
  0xff   : > { %v710_v3 = vpop.f32.mrf.mxu0 }
 0x101   : > { %v711_v52 = vpop.f32.mrf.mxu0 }
 0x102   : > { %v712_v53 = vadd.f32 %v711_v52, %v710_v3 }
 0x104   : > { %v555_v54 = vadd.f32 %v712_v53, %v484_v51 }
 0x106   : > { %557 = vst.msk [vmem:[#allocation2] sm:$0x1f] %vm556_vm5, %v555_v54 }
 0x107   : > { %759 = shalt.err (!%p756_p0)
}
 0x108   : > { %714 = dma.vmem_to_hbm [thread:$0]  (%p973_p7), %s568_s27, 128, %s999_s2, [#allocation3]  }
 0x109   : > { %783 = dma.done.wait (%p973_p7), [#allocation3], 128  }
 0x10a   : > { %785 = vsyncadd (%p973_p7), [#allocation3], 4294967168 }
 0x10b PF: > { %s13_s11 = sadd.s32 1, %s796_s11   ;;  %s1001_s9 = smov %s792_s10 }
 0x10c   : > { %p10_p1 = scmp.ge.s32.totalorder %s13_s11, 4   ;;  %s1002_s10 = smov %s1004_s13 }
 0x10e   :  { %12 = sbr.rel (!%p10_p1) target bundleno = 2 (0x2), region = 63 }
 0x113   :  { %580 = vsyncpa [#allocation3], 1 }
 0x114   :  { %582 = vsyncpa [#allocation3 + $0x1], 1 }

</bundles_post_ra>
